<compile_context>
chip_gen: v5e
topology: v5e:2x2
jax: 0.10.0
libtpu: 0.0.40
codegen_flags: <defaults>
</compile_context>

<pallas_src>
import functools
import math

import jax
import jax.numpy as jnp
import numpy as np
from jax.experimental import pallas as pl
from jax.experimental.pallas import tpu as pltpu


def _qkv_proj_kernel(q_ref, k_ref, v_ref,
                     wq_ref, wk_ref, wv_ref,
                     bq_ref, bk_ref, bv_ref,
                     qp_ref, kp_ref, vp_ref):
    """One grid point = one (batch, seq-tile).  Projects Q, K, V for all heads.

    q/k/v_ref : (1, ts, Din) f32
    w*_ref    : (Din, Dout)  f32   pre-transposed (Wq pre-scaled by 1/sqrt(dh))
    b*_ref    : (1, Dout)    f32   (bq pre-scaled by 1/sqrt(dh))
    out refs  : (1, ts, Dout) bf16
    """
    qp_ref[0] = (jnp.dot(q_ref[0], wq_ref[...],
                         preferred_element_type=jnp.float32)
                 + bq_ref[...]).astype(qp_ref.dtype)
    kp_ref[0] = (jnp.dot(k_ref[0], wk_ref[...],
                         preferred_element_type=jnp.float32)
                 + bk_ref[...]).astype(kp_ref.dtype)
    vp_ref[0] = (jnp.dot(v_ref[0], wv_ref[...],
                         preferred_element_type=jnp.float32)
                 + bv_ref[...]).astype(vp_ref.dtype)


def _attn_kernel(qp_ref, kp_ref, vp_ref, o_ref, *, nhead):
    """One grid point = one (batch, q-tile).

    qp_ref : (1, tq, Dout) bf16   projected queries (scale already folded in)
    kp_ref : (1, S,  Dout) bf16   projected keys   (full sequence)
    vp_ref : (1, S,  Dout) bf16   projected values (full sequence)
    o_ref  : (1, tq, Dout) f32    lane-dense output tile (final layout)
    """
    dout = o_ref.shape[-1]
    dh = dout // nhead

    for h in range(nhead):                       # static head loop
        lo = h * dh
        qh = qp_ref[0, :, lo:lo + dh]            # (tq, dh) bf16
        kh = kp_ref[0, :, lo:lo + dh]            # (S,  dh) bf16
        vh = vp_ref[0, :, lo:lo + dh]            # (S,  dh) bf16
        # Transpose-free contraction over dh: (tq, dh) x (S, dh) -> (tq, S).
        scores = jax.lax.dot_general(
            qh, kh, dimension_numbers=(((1,), (1,)), ((), ())),
            preferred_element_type=jnp.float32)
        attn = jnp.maximum(scores, 0.0)          # relu score activation (f32)
        out_h = jnp.dot(attn.astype(jnp.bfloat16), vh,
                        preferred_element_type=jnp.float32)   # (tq, dh)
        # Direct store into this head's static lane slice -- no concat.
        o_ref[0, :, lo:lo + dh] = out_h.astype(o_ref.dtype)


def _pick_seq_tile(S, cap=512):
    if S <= cap:
        return S
    for cand in (512, 256, 128, 64, 32, 16, 8):
        if cand <= cap and S % cand == 0:
            return cand
    return S   # ragged S: fall back to one full-length tile


def _vmem_limit(working_set_bytes):
    # 2x headroom, clamped to [16 MiB, 64 MiB] (64 MiB <= physical VMEM on all
    # of v5e / v6e / v7x).
    return int(min(max(2 * working_set_bytes, 16 << 20), 64 << 20))


def multi_head_attention(query, key, value, wq, bq, wk, bk, wv, bv, nhead):
    """query/key/value: (B, S, Din) f32;  w*: (Dout, Din) f32;  b*: (Dout,) f32."""
    B, S, Din = query.shape
    Dout = wq.shape[0]
    assert Dout % nhead == 0, "out_dim must be divisible by nhead"
    dh = Dout // nhead

    # Pre-transpose weights once in XLA and fold the 1/sqrt(dh) score scale
    # into Wq / bq (valid because relu(c*x) = c*relu(x) for c > 0).
    scale = 1.0 / math.sqrt(dh)
    wq_t = wq.T * scale                      # (Din, Dout)
    wk_t = wk.T
    wv_t = wv.T
    bq2 = (bq * scale).reshape(1, Dout)
    bk2 = bk.reshape(1, Dout)
    bv2 = bv.reshape(1, Dout)

    # ---------------- QKV projection kernel ----------------
    ts = _pick_seq_tile(S)
    n_s_tiles = S // ts

    x_spec = pl.BlockSpec((1, ts, Din), lambda b, i: (b, i, 0))
    w_spec = pl.BlockSpec((Din, Dout), lambda b, i: (0, 0))
    bias_spec = pl.BlockSpec((1, Dout), lambda b, i: (0, 0))
    p_spec = pl.BlockSpec((1, ts, Dout), lambda b, i: (b, i, 0))

    proj_ws = (2 * 3 * ts * Din * 4          # double-buffered q/k/v tiles (f32)
               + 2 * 3 * Din * Dout * 4      # double-buffered weights (f32)
               + 2 * 3 * Dout * 4            # biases
               + 2 * 3 * ts * Dout * 2       # double-buffered bf16 outputs
               + 3 * ts * Dout * 4)          # f32 intermediates
    proj_cost = pl.CostEstimate(
        flops=6 * B * S * Din * Dout, transcendentals=0,
        bytes_accessed=4 * 3 * B * S * Din + 4 * 3 * Din * Dout
                       + 2 * 3 * B * S * Dout)

    qp, kp, vp = pl.pallas_call(
        _qkv_proj_kernel,
        out_shape=(jax.ShapeDtypeStruct((B, S, Dout), jnp.bfloat16),) * 3,
        grid_spec=pltpu.PrefetchScalarGridSpec(
            num_scalar_prefetch=0,
            grid=(B, n_s_tiles),
            in_specs=[x_spec, x_spec, x_spec,
                      w_spec, w_spec, w_spec,
                      bias_spec, bias_spec, bias_spec],
            out_specs=[p_spec, p_spec, p_spec],
        ),
        compiler_params=pltpu.CompilerParams(
            dimension_semantics=("parallel", "parallel"),
            vmem_limit_bytes=_vmem_limit(proj_ws)),
        cost_estimate=proj_cost,
    )(query, key, value, wq_t, wk_t, wv_t, bq2, bk2, bv2)

    # ---------------- Attention kernel ----------------
    tq = _pick_seq_tile(S)
    n_q_tiles = S // tq

    attn_ws = (2 * tq * Dout * 2             # double-buffered q tiles (bf16)
               + 2 * 2 * S * Dout * 2        # double-buffered K and V (bf16)
               + 2 * tq * Dout * 4           # double-buffered f32 output tiles
               + tq * S * 4 + tq * S * 2     # scores (f32) + attn (bf16)
               + tq * Dout * 4)              # per-head temporaries
    attn_cost = pl.CostEstimate(
        flops=4 * B * S * S * Dout, transcendentals=0,
        bytes_accessed=2 * 3 * B * S * Dout + 4 * B * S * Dout)

    return pl.pallas_call(
        functools.partial(_attn_kernel, nhead=nhead),
        out_shape=jax.ShapeDtypeStruct((B, S, Dout), jnp.float32),
        grid_spec=pltpu.PrefetchScalarGridSpec(
            num_scalar_prefetch=0,
            grid=(B, n_q_tiles),
            in_specs=[pl.BlockSpec((1, tq, Dout), lambda b, i: (b, i, 0)),
                      pl.BlockSpec((1, S, Dout), lambda b, i: (b, 0, 0)),
                      pl.BlockSpec((1, S, Dout), lambda b, i: (b, 0, 0))],
            out_specs=pl.BlockSpec((1, tq, Dout), lambda b, i: (b, i, 0)),
        ),
        compiler_params=pltpu.CompilerParams(
            # No carried scratch -> both axes parallel (second TC on v7x even
            # for B == 1).  The K/V block index only changes with b, so the
            # pipeline does not re-fetch it across q-tiles.
            dimension_semantics=("parallel", "parallel"),
            vmem_limit_bytes=_vmem_limit(attn_ws)),
        cost_estimate=attn_cost,
    )(qp, kp, vp)


def _xavier_uniform(key, out_dim, in_dim):
    limit = math.sqrt(6.0 / (in_dim + out_dim))
    return jax.random.uniform(key, (out_dim, in_dim), jnp.float32, -limit, limit)


def _reference(query, key, value, wq, bq, wk, bk, wv, bv, nhead):
    B, S, _ = query.shape
    Dout = wq.shape[0]
    dh = Dout // nhead

    def proj(x, w, b):
        y = jnp.einsum("bsi,oi->bso", x, w) + b
        return y.reshape(B, S, nhead, dh).transpose(0, 2, 1, 3)  # (B, H, S, dh)

    q = proj(query, wq, bq)
    k = proj(key, wk, bk)
    v = proj(value, wv, bv)
    scores = jnp.einsum("bhqd,bhkd->bhqk", q, k) / math.sqrt(dh)
    attn = jnp.maximum(scores, 0.0)
    out = jnp.einsum("bhqk,bhkd->bhqd", attn, v)
    return out.transpose(0, 2, 1, 3).reshape(B, S, Dout)


if __name__ == "__main__":
    B, S = 2, 8
    in_dim, out_dim, nhead = 32, 32, 4

    root = jax.random.PRNGKey(0)
    kq, kk, kv, k1, k2, k3 = jax.random.split(root, 6)

    query = jax.random.normal(kq, (B, S, in_dim), jnp.float32)
    key = jax.random.normal(kk, (B, S, in_dim), jnp.float32)
    value = jax.random.normal(kv, (B, S, in_dim), jnp.float32)

    wq = _xavier_uniform(k1, out_dim, in_dim)
    wk = _xavier_uniform(k2, out_dim, in_dim)
    wv = _xavier_uniform(k3, out_dim, in_dim)
    bq = jnp.zeros((out_dim,), jnp.float32)
    bk = jnp.zeros((out_dim,), jnp.float32)
    bv = jnp.zeros((out_dim,), jnp.float32)

    out = multi_head_attention(query, key, value, wq, bq, wk, bk, wv, bv, nhead)
    out = jax.block_until_ready(out)

    ref = _reference(query, key, value, wq, bq, wk, bk, wv, bv, nhead)
    # bf16 storage of projected Q/K/V and bf16 attention operands (f32
    # accumulation) -> tolerance loosened vs. the pure-f32 reference.
    np.testing.assert_allclose(np.asarray(out), np.asarray(ref),
                               rtol=2e-2, atol=5e-2)

    print("KERNEL_OK")
</pallas_src>

<mosaic_0001>
module attributes {stable_mosaic.version = 11 : i64} {
  func.func @_qkv_proj_kernel(%arg0: i32, %arg1: i32, %arg2: memref<1x8x32xf32, #tpu.memory_space<vmem>>, %arg3: memref<1x8x32xf32, #tpu.memory_space<vmem>>, %arg4: memref<1x8x32xf32, #tpu.memory_space<vmem>>, %arg5: memref<32x32xf32, #tpu.memory_space<vmem>>, %arg6: memref<32x32xf32, #tpu.memory_space<vmem>>, %arg7: memref<32x32xf32, #tpu.memory_space<vmem>>, %arg8: memref<1x32xf32, #tpu.memory_space<vmem>>, %arg9: memref<1x32xf32, #tpu.memory_space<vmem>>, %arg10: memref<1x32xf32, #tpu.memory_space<vmem>>, %arg11: memref<1x8x32xbf16, #tpu.memory_space<vmem>>, %arg12: memref<1x8x32xbf16, #tpu.memory_space<vmem>>, %arg13: memref<1x8x32xbf16, #tpu.memory_space<vmem>>) attributes {dimension_semantics = [#tpu.dimension_semantics<parallel>, #tpu.dimension_semantics<parallel>], iteration_bounds = array<i64: 2, 1>, scalar_prefetch = 0 : i64, scratch_operands = 0 : i64, tpu.core_type = #tpu.core_type<tc>, window_params = [{transform_indices = @transform_0, window_bounds = array<i64: 1, 8, 32>}, {transform_indices = @transform_1, window_bounds = array<i64: 1, 8, 32>}, {transform_indices = @transform_2, window_bounds = array<i64: 1, 8, 32>}, {pipeline_mode = #tpu.pipeline_mode<synchronous>, transform_indices = @transform_3, window_bounds = array<i64: 32, 32>}, {pipeline_mode = #tpu.pipeline_mode<synchronous>, transform_indices = @transform_4, window_bounds = array<i64: 32, 32>}, {pipeline_mode = #tpu.pipeline_mode<synchronous>, transform_indices = @transform_5, window_bounds = array<i64: 32, 32>}, {pipeline_mode = #tpu.pipeline_mode<synchronous>, transform_indices = @transform_6, window_bounds = array<i64: 1, 32>}, {pipeline_mode = #tpu.pipeline_mode<synchronous>, transform_indices = @transform_7, window_bounds = array<i64: 1, 32>}, {pipeline_mode = #tpu.pipeline_mode<synchronous>, transform_indices = @transform_8, window_bounds = array<i64: 1, 32>}, {transform_indices = @transform_9, window_bounds = array<i64: 1, 8, 32>}, {transform_indices = @transform_10, window_bounds = array<i64: 1, 8, 32>}, {transform_indices = @transform_11, window_bounds = array<i64: 1, 8, 32>}]} {
    %c0 = arith.constant 0 : index
    %c0_0 = arith.constant 0 : index
    %c0_1 = arith.constant 0 : index
    %0 = vector.load %arg2[%c0, %c0_0, %c0_1] : memref<1x8x32xf32, #tpu.memory_space<vmem>>, vector<1x8x32xf32>
    %1 = vector.shape_cast %0 : vector<1x8x32xf32> to vector<8x32xf32>
    %c0_2 = arith.constant 0 : index
    %c0_3 = arith.constant 0 : index
    %2 = vector.load %arg5[%c0_2, %c0_3] : memref<32x32xf32, #tpu.memory_space<vmem>>, vector<32x32xf32>
    %cst = arith.constant dense<0.000000e+00> : vector<8x32xf32>
    %3 = tpu.matmul %1, %2, %cst {dimension_numbers = #tpu.dot_dimension_numbers<[1], [0], [0], [1], [0, 0, 1, 1], [], []>} : vector<8x32xf32>, vector<32x32xf32>, vector<8x32xf32> -> vector<8x32xf32>
    %c0_4 = arith.constant 0 : index
    %c0_5 = arith.constant 0 : index
    %4 = vector.load %arg8[%c0_4, %c0_5] : memref<1x32xf32, #tpu.memory_space<vmem>>, vector<1x32xf32>
    %5 = vector.broadcast %4 : vector<1x32xf32> to vector<8x32xf32>
    %6 = arith.addf %3, %5 : vector<8x32xf32>
    %7 = arith.truncf %6 : vector<8x32xf32> to vector<8x32xbf16>
    %c0_6 = arith.constant 0 : index
    %c0_7 = arith.constant 0 : index
    %c0_8 = arith.constant 0 : index
    %8 = vector.load %arg11[%c0_6, %c0_7, %c0_8] : memref<1x8x32xbf16, #tpu.memory_space<vmem>>, vector<1x8x32xbf16>
    %9 = vector.shape_cast %8 : vector<1x8x32xbf16> to vector<8x32xbf16>
    %10 = vector.shape_cast %7 : vector<8x32xbf16> to vector<1x8x32xbf16>
    tpu.vector_store %arg11[%c0_6, %c0_7, %c0_8], %10 {strides = array<i32>} : memref<1x8x32xbf16, #tpu.memory_space<vmem>>, vector<1x8x32xbf16>,
    %c0_9 = arith.constant 0 : index
    %c0_10 = arith.constant 0 : index
    %c0_11 = arith.constant 0 : index
    %11 = vector.load %arg3[%c0_9, %c0_10, %c0_11] : memref<1x8x32xf32, #tpu.memory_space<vmem>>, vector<1x8x32xf32>
    %12 = vector.shape_cast %11 : vector<1x8x32xf32> to vector<8x32xf32>
    %c0_12 = arith.constant 0 : index
    %c0_13 = arith.constant 0 : index
    %13 = vector.load %arg6[%c0_12, %c0_13] : memref<32x32xf32, #tpu.memory_space<vmem>>, vector<32x32xf32>
    %cst_14 = arith.constant dense<0.000000e+00> : vector<8x32xf32>
    %14 = tpu.matmul %12, %13, %cst_14 {dimension_numbers = #tpu.dot_dimension_numbers<[1], [0], [0], [1], [0, 0, 1, 1], [], []>} : vector<8x32xf32>, vector<32x32xf32>, vector<8x32xf32> -> vector<8x32xf32>
    %c0_15 = arith.constant 0 : index
    %c0_16 = arith.constant 0 : index
    %15 = vector.load %arg9[%c0_15, %c0_16] : memref<1x32xf32, #tpu.memory_space<vmem>>, vector<1x32xf32>
    %16 = vector.broadcast %15 : vector<1x32xf32> to vector<8x32xf32>
    %17 = arith.addf %14, %16 : vector<8x32xf32>
    %18 = arith.truncf %17 : vector<8x32xf32> to vector<8x32xbf16>
    %c0_17 = arith.constant 0 : index
    %c0_18 = arith.constant 0 : index
    %c0_19 = arith.constant 0 : index
    %19 = vector.load %arg12[%c0_17, %c0_18, %c0_19] : memref<1x8x32xbf16, #tpu.memory_space<vmem>>, vector<1x8x32xbf16>
    %20 = vector.shape_cast %19 : vector<1x8x32xbf16> to vector<8x32xbf16>
    %21 = vector.shape_cast %18 : vector<8x32xbf16> to vector<1x8x32xbf16>
    tpu.vector_store %arg12[%c0_17, %c0_18, %c0_19], %21 {strides = array<i32>} : memref<1x8x32xbf16, #tpu.memory_space<vmem>>, vector<1x8x32xbf16>,
    %c0_20 = arith.constant 0 : index
    %c0_21 = arith.constant 0 : index
    %c0_22 = arith.constant 0 : index
    %22 = vector.load %arg4[%c0_20, %c0_21, %c0_22] : memref<1x8x32xf32, #tpu.memory_space<vmem>>, vector<1x8x32xf32>
    %23 = vector.shape_cast %22 : vector<1x8x32xf32> to vector<8x32xf32>
    %c0_23 = arith.constant 0 : index
    %c0_24 = arith.constant 0 : index
    %24 = vector.load %arg7[%c0_23, %c0_24] : memref<32x32xf32, #tpu.memory_space<vmem>>, vector<32x32xf32>
    %cst_25 = arith.constant dense<0.000000e+00> : vector<8x32xf32>
    %25 = tpu.matmul %23, %24, %cst_25 {dimension_numbers = #tpu.dot_dimension_numbers<[1], [0], [0], [1], [0, 0, 1, 1], [], []>} : vector<8x32xf32>, vector<32x32xf32>, vector<8x32xf32> -> vector<8x32xf32>
    %c0_26 = arith.constant 0 : index
    %c0_27 = arith.constant 0 : index
    %26 = vector.load %arg10[%c0_26, %c0_27] : memref<1x32xf32, #tpu.memory_space<vmem>>, vector<1x32xf32>
    %27 = vector.broadcast %26 : vector<1x32xf32> to vector<8x32xf32>
    %28 = arith.addf %25, %27 : vector<8x32xf32>
    %29 = arith.truncf %28 : vector<8x32xf32> to vector<8x32xbf16>
    %c0_28 = arith.constant 0 : index
    %c0_29 = arith.constant 0 : index
    %c0_30 = arith.constant 0 : index
    %30 = vector.load %arg13[%c0_28, %c0_29, %c0_30] : memref<1x8x32xbf16, #tpu.memory_space<vmem>>, vector<1x8x32xbf16>
    %31 = vector.shape_cast %30 : vector<1x8x32xbf16> to vector<8x32xbf16>
    %32 = vector.shape_cast %29 : vector<8x32xbf16> to vector<1x8x32xbf16>
    tpu.vector_store %arg13[%c0_28, %c0_29, %c0_30], %32 {strides = array<i32>} : memref<1x8x32xbf16, #tpu.memory_space<vmem>>, vector<1x8x32xbf16>,
    return
  }
  func.func @transform_0(%arg0: i32, %arg1: i32) -> (i32, i32, i32) {
    %c0_i32 = arith.constant 0 : i32
    %c0_i32_0 = arith.constant 0 : i32
    return %arg0, %arg1, %c0_i32 : i32, i32, i32
  }
  func.func @transform_1(%arg0: i32, %arg1: i32) -> (i32, i32, i32) {
    %c0_i32 = arith.constant 0 : i32
    %c0_i32_0 = arith.constant 0 : i32
    return %arg0, %arg1, %c0_i32 : i32, i32, i32
  }
  func.func @transform_2(%arg0: i32, %arg1: i32) -> (i32, i32, i32) {
    %c0_i32 = arith.constant 0 : i32
    %c0_i32_0 = arith.constant 0 : i32
    return %arg0, %arg1, %c0_i32 : i32, i32, i32
  }
  func.func @transform_3(%arg0: i32, %arg1: i32) -> (i32, i32) {
    %c0_i32 = arith.constant 0 : i32
    %c0_i32_0 = arith.constant 0 : i32
    %c0_i32_1 = arith.constant 0 : i32
    return %c0_i32, %c0_i32_0 : i32, i32
  }
  func.func @transform_4(%arg0: i32, %arg1: i32) -> (i32, i32) {
    %c0_i32 = arith.constant 0 : i32
    %c0_i32_0 = arith.constant 0 : i32
    %c0_i32_1 = arith.constant 0 : i32
    return %c0_i32, %c0_i32_0 : i32, i32
  }
  func.func @transform_5(%arg0: i32, %arg1: i32) -> (i32, i32) {
    %c0_i32 = arith.constant 0 : i32
    %c0_i32_0 = arith.constant 0 : i32
    %c0_i32_1 = arith.constant 0 : i32
    return %c0_i32, %c0_i32_0 : i32, i32
  }
  func.func @transform_6(%arg0: i32, %arg1: i32) -> (i32, i32) {
    %c0_i32 = arith.constant 0 : i32
    %c0_i32_0 = arith.constant 0 : i32
    %c0_i32_1 = arith.constant 0 : i32
    return %c0_i32, %c0_i32_0 : i32, i32
  }
  func.func @transform_7(%arg0: i32, %arg1: i32) -> (i32, i32) {
    %c0_i32 = arith.constant 0 : i32
    %c0_i32_0 = arith.constant 0 : i32
    %c0_i32_1 = arith.constant 0 : i32
    return %c0_i32, %c0_i32_0 : i32, i32
  }
  func.func @transform_8(%arg0: i32, %arg1: i32) -> (i32, i32) {
    %c0_i32 = arith.constant 0 : i32
    %c0_i32_0 = arith.constant 0 : i32
    %c0_i32_1 = arith.constant 0 : i32
    return %c0_i32, %c0_i32_0 : i32, i32
  }
  func.func @transform_9(%arg0: i32, %arg1: i32) -> (i32, i32, i32) {
    %c0_i32 = arith.constant 0 : i32
    %c0_i32_0 = arith.constant 0 : i32
    return %arg0, %arg1, %c0_i32 : i32, i32, i32
  }
  func.func @transform_10(%arg0: i32, %arg1: i32) -> (i32, i32, i32) {
    %c0_i32 = arith.constant 0 : i32
    %c0_i32_0 = arith.constant 0 : i32
    return %arg0, %arg1, %c0_i32 : i32, i32, i32
  }
  func.func @transform_11(%arg0: i32, %arg1: i32) -> (i32, i32, i32) {
    %c0_i32 = arith.constant 0 : i32
    %c0_i32_0 = arith.constant 0 : i32
    return %arg0, %arg1, %c0_i32 : i32, i32, i32
  }
}

</mosaic_0001>

<bundles_post_ra>
// kernel: tpu_custom_call.1
= control target key start
LH: loop header
LB: loop body
LE: loop exit
PB: predicated region body
PF: predicated region fallthrough
CT: control target
= control target key end

     0   :  { %s1818_s0 = inlined_call_operand.hbm [shape: f32[2,8,32], index: 0, kind: input, shape index: {}]   ;;  %s1819_s1 = inlined_call_operand.hbm [shape: f32[2,8,32], index: 1, kind: input, shape index: {}]   ;;  %s1820_s2 = inlined_call_operand.hbm [shape: f32[2,8,32], index: 2, kind: input, shape index: {}]   ;;  %s1821_s3 = inlined_call_operand.hbm [shape: f32[32,32], index: 3, kind: input, shape index: {}]   ;;  %s1822_s4 = inlined_call_operand.hbm [shape: f32[32,32], index: 4, kind: input, shape index: {}]   ;;  %s1823_s5 = inlined_call_operand.hbm [shape: f32[32,32], index: 5, kind: input, shape index: {}]   ;;  %s1824_s6 = inlined_call_operand.vmem [shape: f32[1,32], index: 6, kind: input, shape index: {}]   ;;  %s1825_s7 = inlined_call_operand.vmem [shape: f32[1,32], index: 7, kind: input, shape index: {}]   ;;  %s1826_s8 = inlined_call_operand.vmem [shape: f32[1,32], index: 8, kind: input, shape index: {}]   ;;  %s1827_s9 = inlined_call_operand.hbm [shape: bf16[2,8,32], index: 9, kind: output, shape index: {0}]   ;;  %s1828_s10 = inlined_call_operand.hbm [shape: bf16[2,8,32], index: 10, kind: output, shape index: {1}]   ;;  %s1829_s11 = inlined_call_operand.hbm [shape: bf16[2,8,32], index: 11, kind: output, shape index: {2}]  }
   0x1   :  { %1846 = sst [smem:[#allocation30_spill]] %s1819_s1 }
   0x2   :  { %1847 = sst [smem:[#allocation31_spill]] %s1821_s3 }
   0x3   :  { %1848 = sst [smem:[#allocation32_spill]] %s1822_s4 }
   0x4   :  { %1849 = sst [smem:[#allocation33_spill]] %s1823_s5 }
   0x5   :  { %1850 = sst [smem:[#allocation34_spill]] %s1824_s6 }
   0x6   :  { %1851 = sst [smem:[#allocation35_spill]] %s1826_s8 }
   0x7   :  { %1852 = sst [smem:[#allocation36_spill]] %s1827_s9 }
   0x8   :  { %1853 = sst [smem:[#allocation37_spill]] %s1829_s11 }
   0x9   :  { %17 = vsyncpa [#allocation3], 0 }
   0xa   :  { %19 = vsyncpa [#allocation3 + $0x1], 0 }
   0xb   :  { %20 = vsyncpa [#allocation6], 0 }
   0xc   :  { %22 = vsyncpa [#allocation6 + $0x1], 0 }
   0xd   :  { %23 = vsyncpa [#allocation9], 0 }
   0xe   :  { %24 = vsyncpa [#allocation12], 0 }
   0xf   :  { %25 = vsyncpa [#allocation4], 0 }
  0x10   :  { %27 = vsyncpa [#allocation4 + $0x1], 0 }
  0x11   :  { %28 = vsyncpa [#allocation15], 0 }
  0x12   :  { %30 = vsyncpa [#allocation15 + $0x1], 0  ;;  %s1507_s17 = smov 0   ;;  %s1509_s18 = smov 0  }
  0x13   :  { %s1511_s19 = smov 0   ;;  %s1513_s20 = smov 0  }
  0x14   :  { %s1515_s21 = smov 0   ;;  %s1517_s22 = smov 0  }
  0x15 LB: > { %1854 = sst [smem:[#allocation23_spill]] %s1420_s17  ;;  %s1538_s23 = sadd.s32 4294967295, %s1440_s22   ;;  %s1440_s22 = sphi %s1517_s22, %s36_s22   ;;  %s1436_s21 = sphi %s1515_s21, %s1887_s21   ;;  %s1432_s20 = sphi %s1513_s20, %s1886_s20   ;;  %s1428_s19 = sphi %s1511_s19, %s1890_s19   ;;  %s1424_s18 = sphi %s1509_s18, %s1889_s18   ;;  %s1420_s17 = sphi %s1507_s17, %s1888_s17  }
  0x16   : > { %1855 = sst [smem:[#allocation24_spill]] %s1436_s21  ;;  %p956_p0 = scmp.ge.s32.totalorder %s1440_s22, 1 }
  0x17   : > { %1856 = sst [smem:[#allocation25_spill]] %s1440_s22  ;;  %p71_p1 = scmp.eq.s32.totalorder %s1538_s23, 0 }
  0x18   : > { %p347_p2 = scmp.lt.s32.totalorder %s1440_s22, 3  ;;  %s1857_s3 = sld [smem:[#allocation31_spill]] }
  0x19   : > { %s1442_s28 = smov [#allocation8]   ;;  %p960_p6 = scmp.ge.s32.totalorder %s1440_s22, 2 }
  0x1a   : > { %p1546_p3 = pnand %p956_p0, %p347_p2  ;;  %s360_s29 = sshll.u32 %s1442_s28, 4  ;;  %s361_s29 = int_to_ptr.vmem [resolvable:$true] %s360_s29 }
  0x1b   : > { %s1830_s12 = smov 128   ;;  %s1832_s13 = smov 8  }
  0x1c   : > { %p1012_p4 = pneg %p1546_p3  ;;  %s1835_s14 = sadd.s32 4294967294, %s1440_s22  }
  0x1d   : > { %s48_s15 = sadd.s32 1, %s1436_s21  ;;  %s57_s16 = sadd.s32 1, %s1428_s19 }
  0x1e   : > { %s358_s26 = sshll.u32 %s1857_s3, 4  ;;  %p1554_p5 = pnand %p1012_p4, %p71_p1  ;;  %s359_s26 = int_to_ptr.hbm [resolvable:$true] %s358_s26 }
  0x1f   : > { %p50_p7 = scmp.ge.s32.totalorder %s48_s15, 2  ;;  %p64_p8 = scmp.ne.s32.totalorder %s1428_s19, %s1424_s18 }
  0x20   : > { %1015 = dma.hbm_to_vmem [thread:$0]  (!%p1554_p5), %s359_s26, 512, %s361_s29, [#allocation9], %s1830_s12, %s1830_s12, %s1832_s13  }
  0x21   : > { %p65_p9 = scmp.eq.s32.totalorder %s1440_s22, 0  ;;  %p70_p10 = scmp.ne.s32.totalorder %s1424_s18, %s1420_s17 }
  0x22   : > { %s1892_s15 = smov (%p50_p7, %s48_s15), 0  ;;  %p278_p13 = scmp.eq.s32.totalorder %s1538_s23, 1 }
  0x23   : > { %1860 = sst [smem:[#allocation26_spill]] %s1892_s15  ;;  %p1574_p11 = por %p65_p9, %p64_p8 }
  0x24   : > { %p1580_p12 = por %p71_p1, %p70_p10  ;;  %s52_s26 = ssub.s32 %s1436_s21, %s1892_s15 }
  0x25   : > { %p55_p0 = scmp.eq.s32.totalorder %s52_s26, 0  ;;  %p284_p2 = scmp.eq.s32.totalorder %s1835_s14, 1 }
  0x26   : > { %p1589_p4 = por %p278_p13, %p64_p8  ;;  %p1045_p7 = scmp.lt.s32.totalorder %s1440_s22, 2 }
  0x27   : > { %s1595_s29 = scalar_select %p55_p0, %s1428_s19, %s57_s16  }
  0x28   : > { %s1863_s28 = scalar_select %p1589_p4, 1, 0 }
  0x29   : > { %1865 = sst [smem:[#allocation28_spill]] %s1595_s29  ;;  %p1597_p9 = por %p284_p2, %p70_p10 }
  0x2a   : > { %1864 = sst [smem:[#allocation27_spill]] %s1863_s28  ;;  %s1840_s13 = sand.u32 1, %s1428_s19  }
  0x2b   : > { %s1866_s12 = scalar_select %p1597_p9, 1, 0 }
  0x2c   : > { %s1604_s3 = sshll.u32 %s1840_s13, 3  ;;  %s1607_s15 = sshll.u32 %s1436_s21, 3 }
  0x2d   : > { %1867 = sst [smem:[#allocation29_spill]] %s1866_s12  ;;  %p1611_p8 = pnand %p1045_p7, %p1574_p11 }
  0x2e   : > { %s431_s16 = sand.u32 1, %s1440_s22   ;;  %s1869_s1 = sld [smem:[#allocation30_spill]] }
  0x2f   : > { %s435_s28 = scalar_lea.vmem [#allocation5], %s1604_s3  ;;  %s1621_s24 = scalar_lea.sflag [#allocation6], %s431_s16 }
  0x30   : > { %s444_s13 = sshll.u32 %s435_s28, 4  ;;  %s1870_s4 = sld [smem:[#allocation32_spill]]  ;;  %s445_s13 = int_to_ptr.vmem [resolvable:$true] %s444_s13 }
  0x31   : > { %s1445_s14 = smov [#allocation10]   ;;  %s1871_s5 = sld [smem:[#allocation33_spill]] }
  0x32   : > { %s1872_s16 = smov 8   ;;  %s1873_s8 = smov 128  }
  0x33   : > { %s1446_s11 = smov [#allocation11]   ;;  %s415_s28 = scalar_lea.vmem [#allocation2], %s1604_s3 }
  0x34   : > { %s440_s12 = scalar_lea.hbm %s1869_s1, %s1607_s15  ;;  %s424_s29 = sshll.u32 %s415_s28, 4  ;;  %s425_s29 = int_to_ptr.vmem [resolvable:$true] %s424_s29 }
  0x35   : > { %s442_s17 = sshll.u32 %s440_s12, 4  ;;  %s374_s12 = sshll.u32 %s1445_s14, 4  ;;  %s443_s17 = int_to_ptr.hbm [resolvable:$true] %s442_s17  ;;  %s375_s12 = int_to_ptr.vmem [resolvable:$true] %s374_s12 }
  0x36   : > { %1028 = dma.hbm_to_vmem [thread:$0]  (!%p1611_p8), %s443_s17, 128, %s445_s13, %s1621_s24  }
  0x37   : > { %s372_s22 = sshll.u32 %s1870_s4, 4  ;;  %s386_s1 = sshll.u32 %s1871_s5, 4  ;;  %s373_s22 = int_to_ptr.hbm [resolvable:$true] %s372_s22  ;;  %s387_s1 = int_to_ptr.hbm [resolvable:$true] %s386_s1 }
  0x38   : > { %1018 = dma.hbm_to_vmem [thread:$0]  (!%p1554_p5), %s373_s22, 512, %s375_s12, [#allocation9], %s1873_s8, %s1873_s8, %s1872_s16  }
  0x39   : > { %s388_s17 = sshll.u32 %s1446_s11, 4  ;;  %s420_s14 = scalar_lea.hbm %s1818_s0, %s1607_s15  ;;  %s389_s17 = int_to_ptr.vmem [resolvable:$true] %s388_s17 }
  0x3a   : > { %1021 = dma.hbm_to_vmem [thread:$0]  (!%p1554_p5), %s387_s1, 512, %s389_s17, [#allocation12], %s1873_s8, %s1873_s8, %s1872_s16  }
  0x3b   : > { %s422_s4 = sshll.u32 %s420_s14, 4  ;;  %s1874_s22 = sand.u32 1, %s1428_s19   ;;  %s423_s4 = int_to_ptr.hbm [resolvable:$true] %s422_s4 }
  0x3c   : > { %s412_s12 = scalar_lea.sflag [#allocation3], %s1874_s22  ;;  %s460_s5 = scalar_lea.hbm %s1820_s2, %s1607_s15 }
  0x3d   : > { %1025 = dma.hbm_to_vmem [thread:$0]  (!%p1611_p8), %s423_s4, 128, %s425_s29, %s412_s12  }
  0x3e   : > { %s455_s9 = scalar_lea.vmem [#allocation7], %s1604_s3  ;;  %s462_s1 = sshll.u32 %s460_s5, 4  ;;  %s463_s1 = int_to_ptr.hbm [resolvable:$true] %s462_s1 }
  0x3f   : > { %s464_s6 = sshll.u32 %s455_s9, 4  ;;  %473 = sbr.rel (%p1546_p3) target bundleno = 248 (0xf8), region = 56  ;;  %s465_s6 = int_to_ptr.vmem [resolvable:$true] %s464_s6 }
  0x40   : > { %1031 = dma.hbm_to_vmem [thread:$0]  (!%p1611_p8), %s463_s1, 128, %s465_s6, %s1621_s24  }
  0x41   : > { %s1662_s8 = sand.u32 (!%p1546_p3), 1, %s1424_s18  }
  0x42   : > { %s1665_s4 = sshll.u32 (!%p1546_p3), %s1662_s8, 3  ;;  %s476_s15 = scalar_lea.sflag (!%p1546_p3), [#allocation3], %s1662_s8 }
  0x43   : > { %s479_s3 = scalar_lea.vmem (!%p1546_p3), [#allocation2], %s1665_s4 }
  0x44   : > { %1395 = dma.done.wait (%p1580_p12), %s476_s15, 128  }
  0x45   : > { %1397 = vsyncadd (%p1580_p12), %s476_s15, 4294967168  ;;  %s485_s5 = sand.u32 1, %s1538_s23   ;;  %s489_s9 = scalar_lea.vmem [#allocation5], %s1665_s4 }
  0x46   : > { %s486_s6 = scalar_lea.sflag [#allocation6], %s485_s5 }
  0x47   : > { %1399 = dma.done.wait (%p1580_p12), %s486_s6, 256  }
  0x48   : > { %1401 = vsyncadd (%p1580_p12), %s486_s6, 4294967040  ;;  %s499_s27 = scalar_lea.vmem [#allocation7], %s1665_s4 }
  0x49   : > { %1403 = dma.done.wait (%p71_p1), [#allocation9], 1024  }
  0x4a   : > { %1405 = vsyncadd (%p71_p1), [#allocation9], 4294966272 }
  0x4b   : > { %1407 = dma.done.wait (%p71_p1), [#allocation12], 512  }
  0x4c   : > { %1409 = vsyncadd (%p71_p1), [#allocation12], 4294966784  ;;  %v648_v0 = vld [vmem:[#allocation11 + $0x18] sm:$0xff]  ;;  %v647_v1 = vld [vmem:[#allocation11 + $0x10] sm:$0xff]  ;;  %vm583_vm0 = vcmask 261120   ;;  %s1695_s25 = sshll.u32 %s1662_s8, 2 }
  0x4d   : > { %668 = vmatpush.msra.mxu2 %v648_v0  ;;  %v614_v2 = vld [vmem:[#allocation10 + $0x18] sm:$0xff]  ;;  %v646_v4 = vld [vmem:[#allocation11 + $0x8] sm:$0xff]  ;;  %v613_v5 = vld [vmem:[#allocation10 + $0x10] sm:$0xff]  ;;  %s983_s26 = sshll.u32 %s1432_s20, 2  ;;  %s566_s14 = scalar_lea.vmem [#allocation14], %s1695_s25  ;;  %vm608_vm1 = vcmask 257024  }
  0x4e   : > { %v578_v3 = vld [vmem:[#allocation8 + $0x18] sm:$0xff]  ;;  %634 = vmatpush.msra.mxu1 %v614_v2  ;;  %v577_v6 = vld [vmem:[#allocation8 + $0x10] sm:$0xff]  ;;  %v612_v7 = vld [vmem:[#allocation10 + $0x8] sm:$0xff]  ;;  %s715_s13 = scalar_lea.hbm %s1828_s10, %s983_s26  ;;  %s1705_s28 = sshll.u32 %s566_s14, 4  ;;  %s718_s28 = int_to_ptr.vmem [resolvable:$true] %s1705_s28 }
  0x4f   : > { %599 = vmatpush.msra.mxu0 %v578_v3  ;;  %669 = vmatpush.msra.mxu2 %v647_v1  ;;  %v576_v8 = vld [vmem:[#allocation8 + $0x8] sm:$0xff]  ;;  %v645_v9 = vld [vmem:[#allocation11] sm:$0xff]  ;;  %v644_v10 = vld [vmem:[%s499_s27] sm:$0xff]  ;;  %s1875_s12 = sld [smem:[#allocation34_spill]]  ;;  %s1714_s4 = sshll.u32 %s715_s13, 4  ;;  %s720_s4 = int_to_ptr.hbm [resolvable:$true] %s1714_s4 }
  0x50   : > { %635 = vmatpush.msra.mxu1 %v613_v5  ;;  %v611_v11 = vld [vmem:[#allocation10] sm:$0xff]  ;;  %v574_v14 = vld [vmem:[%s479_s3] sm:$0xff]  ;;  %s1876_s1 = sld [smem:[#allocation36_spill]]  ;;  %s559_s15 = scalar_lea.vmem [#allocation13], %s1695_s25 }
  0x51   : > { %600 = vmatpush.msra.mxu0 %v577_v6  ;;  %670 = vmatpush.msra.mxu2 %v646_v4  ;;  %v575_v12 = vld [vmem:[#allocation8] sm:$0xff]  ;;  %v1103_v15 = vld [vmem:[%s1825_s7] ss:$0 sm:$0xff]  ;;  %s1719_s3 = sshll.u32 %s559_s15, 4  ;;  %s1877_s24 = sld [smem:[#allocation35_spill]]  ;;  %s703_s3 = int_to_ptr.vmem [resolvable:$true] %s1719_s3 }
  0x52   : > { %636 = vmatpush.msra.mxu1 %v612_v7  ;;  %v610_v13 = vld [vmem:[%s489_s9] sm:$0xff]  ;;  %s1878_s21 = sld [smem:[#allocation37_spill]] }
  0x53   : > { %601 = vmatpush.msra.mxu0 %v576_v8  ;;  %671 = vmatpush.msra.mxu2 %v645_v9 }
  0x54   : > { %979 = vmatmul.msk.f32.vlgmr.msra.gmra.mxu2 %vm583_vm0, %v644_v10  ;;  %637 = vmatpush.msra.mxu1 %v611_v11 }
  0x55   : > { %602 = vmatpush.msra.mxu0 %v575_v12  ;;  %978 = vmatmul.msk.f32.vlgmr.msra.gmra.mxu1 %vm583_vm0, %v610_v13  ;;  %v1104_v16 = vld [vmem:[%s1875_s12] ss:$0 sm:$0xff]  ;;  %s573_s12 = scalar_lea.vmem [#allocation16], %s1695_s25 }
  0x56   : > { %977 = vmatmul.msk.f32.vlgmr.msra.gmra.mxu0 %vm583_vm0, %v574_v14  ;;  %s700_s20 = scalar_lea.hbm %s1876_s1, %s983_s26  ;;  %s1736_s30 = sshll.u32 %s573_s12, 4  ;;  %s733_s30 = int_to_ptr.vmem [resolvable:$true] %s1736_s30 }
  0x57   : > { %s1721_s6 = sshll.u32 %s700_s20, 4  ;;  %v1105_v21 = vld [vmem:[%s1877_s24] ss:$0 sm:$0xff]  ;;  %s1742_s20 = scalar_lea.sflag [#allocation15], %s485_s5  ;;  %s705_s6 = int_to_ptr.hbm [resolvable:$true] %s1721_s6 }
  0x58   : > { %s1879_s13 = smov %s1878_s21  ;;  %s730_s29 = scalar_lea.hbm %s1878_s21, %s983_s26 }
  0x59   : > { %s1738_s11 = sshll.u32 %s730_s29, 4  ;;  %s1300_s26 = sshra.s32 %s720_s4, 4  ;;  %s1301_s26 = int_to_ptr.hbm [resolvable:$true] %s1300_s26  ;;  %s735_s11 = int_to_ptr.hbm [resolvable:$true] %s1738_s11 }
  0x5a   : > { %s1302_s9 = scalar_lea.hbm %s1301_s26, 4  ;;  %p1307_p10 = scmp.lt.s32.totalorder %s1301_s26, %s1828_s10 }
  0x5b   : > { %p1303_p1 = scmp.ne.s32.totalorder %s1301_s26, %s1302_s9 }
  0x5d   : > { %p1304_p3 = pnand %p1303_p1, %p1589_p4 }
  0x5f   : > { %p1305_p5 = pneg %p1304_p3 }
  0xd2   : > { %v639_v17 = vpop.f32.mrf.mxu1 }
  0xd3   : > { %v640_v18 = vadd.f32 %v1103_v15, %v639_v17  ;;  %v604_v19 = vpop.f32.mrf.mxu0 }
  0xd4   : > { %v605_v20 = vadd.f32 %v1104_v16, %v604_v19 }
  0xd5   : > { %v642_v22 = vpack.c.bf16 %v640_v18, %v640_v18 }
  0xd6   : > { %v607_v23 = vpack.c.bf16 %v605_v20, %v605_v20 }
  0xd7   : > { %v673_v24 = vpop.f32.mrf.mxu2  ;;  %643 = vst.msk [vmem:[%s566_s14] sm:$0xf] %vm608_vm1, %v642_v22  ;;  %s1306_s14 = scalar_lea.hbm %s1828_s10, 8 }
  0xd8   : > { %v674_v25 = vadd.f32 %v1105_v21, %v673_v24  ;;  %p1308_p11 = scmp.lt.s32.totalorder %s1306_s14, %s1302_s9 }
  0xda   : > { %p1309_p12 = por %p1308_p11, %p1307_p10 }
  0xdc   : > { %p1310_p13 = pnand %p1309_p12, %p1305_p5 }
  0xde   : > { %1313 = shalt.err (!%p1310_p13)
}
  0xdf   : > { %1007 = dma.vmem_to_hbm [thread:$0]  (%p1589_p4), %s718_s28, 64, %s720_s4, %s1742_s20   ;;  %609 = vst.msk [vmem:[%s559_s15] sm:$0xf] %vm608_vm1, %v607_v23 }
  0xe0   : > { %s679_s23 = scalar_lea.sflag [#allocation4], %s1662_s8  ;;  %s1328_s5 = sshra.s32 %s705_s6, 4  ;;  %s1329_s5 = int_to_ptr.hbm [resolvable:$true] %s1328_s5 }
  0xe1   : > { %s1330_s21 = scalar_lea.hbm %s1329_s5, 4  ;;  %s1334_s9 = scalar_lea.hbm %s1876_s1, 8 }
  0xe2   : > { %p1331_p0 = scmp.ne.s32.totalorder %s1329_s5, %s1330_s21  ;;  %p1335_p8 = scmp.lt.s32.totalorder %s1329_s5, %s1876_s1 }
  0xe3   : > { %p1336_p1 = scmp.lt.s32.totalorder %s1334_s9, %s1330_s21 }
  0xe4   : > { %p1332_p2 = pnand %p1331_p0, %p1589_p4 }
  0xe5   : > { %p1337_p3 = por %p1336_p1, %p1335_p8 }
  0xe6   : > { %p1333_p7 = pneg %p1332_p2 }
  0xe8   : > { %p1338_p5 = pnand %p1337_p3, %p1333_p7 }
  0xea   : > { %1341 = shalt.err (!%p1338_p5)
}
  0xeb   : > { %1006 = dma.vmem_to_hbm [thread:$0]  (%p1589_p4), %s703_s3, 64, %s705_s6, %s679_s23   ;;  %v676_v26 = vpack.c.bf16 %v674_v25, %v674_v25 }
  0xec   : > { %s1356_s8 = sshra.s32 %s735_s11, 4  ;;  %s1362_s14 = scalar_lea.hbm %s1879_s13, 8  ;;  %s1357_s8 = int_to_ptr.hbm [resolvable:$true] %s1356_s8 }
  0xed   : > { %677 = vst.msk [vmem:[%s573_s12] sm:$0xf] %vm608_vm1, %v676_v26  ;;  %s1358_s28 = scalar_lea.hbm %s1357_s8, 4  ;;  %p1363_p13 = scmp.lt.s32.totalorder %s1357_s8, %s1879_s13 }
  0xee   : > { %p1359_p10 = scmp.ne.s32.totalorder %s1357_s8, %s1358_s28  ;;  %p1364_p0 = scmp.lt.s32.totalorder %s1362_s14, %s1358_s28 }
  0xf0   : > { %p1360_p11 = pnand %p1359_p10, %p1589_p4  ;;  %p1365_p2 = por %p1364_p0, %p1363_p13 }
  0xf2   : > { %p1361_p12 = pneg %p1360_p11 }
  0xf4   : > { %p1366_p7 = pnand %p1365_p2, %p1361_p12 }
  0xf6   : > { %1369 = shalt.err (!%p1366_p7)
}
  0xf7   : > { %1008 = dma.vmem_to_hbm [thread:$0]  (%p1589_p4), %s733_s30, 64, %s735_s11, %s1742_s20  }
  0xf8 PF: > { %s1881_s25 = sld [smem:[#allocation23_spill]]  ;;  %p1033_p8 = pnand %p960_p6, %p1597_p9 }
  0xf9   : > { %s1883_s6 = sld [smem:[#allocation25_spill]] }
  0xfa   : > { %p1034_p1 = pneg %p1033_p8 }
  0xfe   : > { %s746_s12 = sand.u32 1, %s1881_s25  }
  0xff   : > { %s747_s23 = scalar_lea.sflag [#allocation4], %s746_s12 }
 0x100   : > { %1411 = dma.done.wait (%p1034_p1), %s747_s23, 64  }
 0x101   : > { %1413 = vsyncadd (%p1034_p1), %s747_s23, 4294967232  ;;  %s1884_s5 = sadd.s32 4294967294, %s1883_s6  }
 0x102   : > { %s756_s21 = sand.u32 1, %s1884_s5  }
 0x103   : > { %s757_s29 = scalar_lea.sflag [#allocation15], %s756_s21 }
 0x104   : > { %1415 = dma.done.wait (%p1034_p1), %s757_s29, 128  }
 0x105   : > { %1417 = vsyncadd (%p1034_p1), %s757_s29, 4294967168  ;;  %s36_s22 = sadd.s32 1, %s1883_s6   ;;  %s1885_s30 = sld [smem:[#allocation28_spill]] }
 0x106   : > { %p33_p4 = scmp.ge.s32.totalorder %s36_s22, 4   ;;  %s1886_s20 = sld [smem:[#allocation24_spill]] }
 0x107   : > { %s1887_s21 = sld [smem:[#allocation26_spill]]  ;;  %s1888_s17 = smov %s1424_s18 }
 0x108   : > { %s1889_s18 = smov %s1428_s19  ;;  %35 = sbr.rel (!%p33_p4) target bundleno = 21 (0x15), region = 169 }
 0x10b   : > { %s1890_s19 = smov %s1885_s30 }
 0x10d   :  { %773 = vsyncpa [#allocation3], 1 }
 0x10e   :  { %775 = vsyncpa [#allocation3 + $0x1], 1 }
 0x10f   :  { %776 = vsyncpa [#allocation6], 1 }
 0x110   :  { %778 = vsyncpa [#allocation6 + $0x1], 1 }
 0x111   :  { %779 = vsyncpa [#allocation9], 1 }
 0x112   :  { %780 = vsyncpa [#allocation12], 1 }
 0x113   :  { %781 = vsyncpa [#allocation4], 1 }
 0x114   :  { %783 = vsyncpa [#allocation4 + $0x1], 1 }
 0x115   :  { %784 = vsyncpa [#allocation15], 1 }
 0x116   :  { %786 = vsyncpa [#allocation15 + $0x1], 1 }

</bundles_post_ra>
